<compile_context>
chip_gen: v5e
topology: v5e:2x2
jax: 0.10.0
libtpu: 0.0.40
codegen_flags: <defaults>
</compile_context>

<pallas_src>
import functools

import jax
import jax.numpy as jnp
from jax.experimental import pallas as pl
from jax.experimental.pallas import tpu as pltpu


def _round_up(a, b):
    return (a + b - 1) // b * b


def _largest_divisor_leq(x, cap):
    """Largest divisor of x that is <= cap (cap >= 1)."""
    best = 1
    d = 1
    while d * d <= x:
        if x % d == 0:
            if d <= cap:
                best = max(best, d)
            q = x // d
            if q <= cap:
                best = max(best, q)
        d += 1
    return best


def _vmem_limit_bytes():
    """Per-generation VMEM limit with headroom for Mosaic internal scratch."""
    try:
        info = pltpu.get_tpu_info()
        cap = int(getattr(info, "vmem_capacity_bytes", 64 * 1024 * 1024))
    except Exception:  # no TPU / interpret mode: conservative default
        cap = 64 * 1024 * 1024
    if cap <= 64 * 1024 * 1024:          # v7x-class: 64 MiB physical
        return 40 * 1024 * 1024
    return min(cap * 3 // 4, 100 * 1024 * 1024)   # v5e/v6e: ~96 MiB of 128 MiB


def _conv_stats_kernel(x_ref, w_ref, ypre_ref, sum_ref, sq_ref, *, k, s, l_out, t_l):
    """Pass 1 (one batch row per grid step):

    x_ref   : (C_in_p, L_total)        zero-padded input row (resident)
    w_ref   : (C_out_p, k*C_in_p)      tap-stacked weight matrix
    ypre_ref: (C_out_p, L_out_pad)     pre-BN conv output (lane-dense stores)
    sum_ref : (C_out_p, 1)             per-batch-row per-channel sum   (partial)
    sq_ref  : (C_out_p, 1)             per-batch-row per-channel sumsq (partial)
    """
    c_out_p, l_out_pad = ypre_ref.shape
    w = w_ref[...]                                  # read once, reused by every tile
    tot_sum = jnp.zeros((c_out_p, 1), jnp.float32)
    tot_sq = jnp.zeros((c_out_p, 1), jnp.float32)

    off = 0
    while off < l_out_pad:                          # static Python loop over L tiles
        width = min(t_l, l_out_pad - off)           # multiple of 128 by construction
        base = off * s
        pieces = []
        for j in range(k):                          # build (k*C_in_p, width) window
            if s == 1:
                pieces.append(x_ref[:, base + j: base + j + width])
            else:
                # TODO(synk): de-interleave x into s phases in the wrapper so this
                # load is lane-contiguous instead of lane-strided.
                pieces.append(x_ref[:, pl.ds(base + j, width, stride=s)])
        window = pieces[0] if k == 1 else jnp.concatenate(pieces, axis=0)

        # Single stacked MXU matmul per tile (k taps folded into the K dimension).
        acc = jnp.dot(w, window, preferred_element_type=jnp.float32)

        # Ragged last tile: columns >= l_out may overlap real input samples -> mask
        # them out of both the stored activation and the batch statistics.
        if off + width > l_out:
            col = jax.lax.broadcasted_iota(jnp.int32, acc.shape, 1)
            acc = jnp.where(col < (l_out - off), acc, 0.0)

        ypre_ref[:, off:off + width] = acc.astype(ypre_ref.dtype)

        # Per-channel statistics (lane-axis reduction -> XLU, overlaps MXU work).
        tot_sum = tot_sum + jnp.sum(acc, axis=1, keepdims=True)
        tot_sq = tot_sq + jnp.sum(acc * acc, axis=1, keepdims=True)
        off += width

    sum_ref[...] = tot_sum
    sq_ref[...] = tot_sq


def _bn_relu_kernel(ypre_ref, scale_ref, shift_ref, o_ref):
    """Pass 2: y = relu(x * scale + shift) on a (Nb, C_out_p, T2) block."""
    x = ypre_ref[...].astype(jnp.float32)
    scale = scale_ref[...][None]                    # (1, C_out_p, 1)
    shift = shift_ref[...][None]
    o_ref[...] = jnp.maximum(x * scale + shift, 0.0).astype(o_ref.dtype)


def dxnet_block(x, weight, bias, gamma, beta, *, k, s, p, eps=1e-5,
                intermediate_dtype=jnp.float32):
    """x: (N, C_in, L) f32;  weight: (C_out, C_in, k);  bias/gamma/beta: (C_out,).

    Returns (N, C_out, L_out), identical to Conv1d -> BatchNorm1d(train) -> ReLU.
    """
    # Conv bias is mathematically cancelled by train-mode BN mean subtraction.
    del bias
    n, c_in, length = x.shape
    c_out = weight.shape[0]
    l_out = (length + 2 * p - k) // s + 1
    assert l_out >= 1

    c_in_p = _round_up(max(c_in, 8), 8)
    c_out_p = _round_up(max(c_out, 8), 8)
    l_out_pad = _round_up(l_out, 128)               # <=127 wasted columns
    t_l = min(l_out_pad, 1024)                      # in-kernel L tile (static)

    # Zero-pad x: conv padding p on the left, channels up to c_in_p, and enough zeros on
    # the right that every in-kernel window load stays in bounds.
    l_total = max(length + 2 * p, (l_out_pad - 1) * s + k)
    x_pad = jnp.pad(x.astype(jnp.float32),
                    ((0, 0), (0, c_in_p - c_in), (p, l_total - length - p)))

    # Tap-stacked weights: W2[co, j*c_in_p + ci] = weight[co, ci, j]  (zero-padded).
    w_stack = jnp.transpose(weight.astype(jnp.float32), (0, 2, 1))       # (c_out, k, c_in)
    w_stack = jnp.pad(w_stack, ((0, c_out_p - c_out), (0, 0), (0, c_in_p - c_in)))
    w_stack = w_stack.reshape(c_out_p, k * c_in_p)

    vmem_limit = _vmem_limit_bytes()

    # ---------------- pass 1: conv + per-batch batch-stat partials ----------------
    # TODO(synk): for very long sequences (c_in_p*l_total*4B approaching the VMEM limit),
    # tile the L axis of x with a halo'd manual DMA instead of keeping the row resident.
    conv_kernel = functools.partial(_conv_stats_kernel, k=k, s=s, l_out=l_out, t_l=t_l)
    ypre, bsum, bsq = pl.pallas_call(
        conv_kernel,
        out_shape=(
            jax.ShapeDtypeStruct((n, c_out_p, l_out_pad), intermediate_dtype),
            jax.ShapeDtypeStruct((n, c_out_p, 1), jnp.float32),
            jax.ShapeDtypeStruct((n, c_out_p, 1), jnp.float32),
        ),
        grid=(n,),
        in_specs=[
            pl.BlockSpec((None, c_in_p, l_total), lambda b: (b, 0, 0)),
            pl.BlockSpec((c_out_p, k * c_in_p), lambda b: (0, 0)),
        ],
        out_specs=(
            pl.BlockSpec((None, c_out_p, l_out_pad), lambda b: (b, 0, 0)),
            pl.BlockSpec((None, c_out_p, 1), lambda b: (b, 0, 0)),
            pl.BlockSpec((None, c_out_p, 1), lambda b: (b, 0, 0)),
        ),
        compiler_params=pltpu.CompilerParams(
            dimension_semantics=("parallel",),      # per-batch partials -> megacore OK
            vmem_limit_bytes=vmem_limit,
        ),
    )(x_pad, w_stack)

    # -------- fold BN (training-mode batch stats) + affine into scale/shift --------
    cnt = float(n * l_out)                          # true element count (padding masked)
    ch_sum = jnp.sum(bsum[:, :, 0], axis=0)
    ch_sq = jnp.sum(bsq[:, :, 0], axis=0)
    mean = ch_sum / cnt
    # TODO(synk): E[x^2]-mean^2 can cancel for |mean| >> std; a shifted / Welford-style
    # accumulation would be more robust for extreme activations.
    var = jnp.maximum(ch_sq / cnt - mean * mean, 0.0)
    gamma_p = jnp.pad(gamma.astype(jnp.float32), (0, c_out_p - c_out))
    beta_p = jnp.pad(beta.astype(jnp.float32), (0, c_out_p - c_out))
    scale = gamma_p * jax.lax.rsqrt(var + eps)
    shift = beta_p - mean * scale
    # TODO(synk): running_mean/running_var buffer updates (training-time side effect of
    # BatchNorm1d) are not modeled; they do not affect the forward output.

    # ---------------- pass 2: normalize + ReLU (large blocks, fully parallel) -------
    units = l_out_pad // 128
    t2 = 128 * _largest_divisor_leq(units, max(1, 2048 // 128))      # lane tile
    row_budget = (4 * 1024 * 1024) // (c_out_p * t2 * 4)             # ~<=4 MiB blocks
    nb = _largest_divisor_leq(n, max(1, row_budget))                 # batch rows / block
    out_dtype = x.dtype
    aliases = {0: 0} if jnp.dtype(intermediate_dtype) == jnp.dtype(out_dtype) else {}

    out_pad = pl.pallas_call(
        _bn_relu_kernel,
        out_shape=jax.ShapeDtypeStruct((n, c_out_p, l_out_pad), out_dtype),
        grid=(n // nb, l_out_pad // t2),
        in_specs=[
            pl.BlockSpec((nb, c_out_p, t2), lambda i, j: (i, 0, j)),
            pl.BlockSpec((c_out_p, 1), lambda i, j: (0, 0)),
            pl.BlockSpec((c_out_p, 1), lambda i, j: (0, 0)),
        ],
        out_specs=pl.BlockSpec((nb, c_out_p, t2), lambda i, j: (i, 0, j)),
        input_output_aliases=aliases,               # reuse the ypre HBM buffer in place
        compiler_params=pltpu.CompilerParams(
            dimension_semantics=("parallel", "parallel"),
            vmem_limit_bytes=vmem_limit,
        ),
    )(ypre, scale[:, None], shift[:, None])

    # Padded channels / columns must never be consumed unsliced.
    return out_pad[:, :c_out, :l_out]


def _reference(x, weight, bias, gamma, beta, *, k, s, p, eps=1e-5):
    """Pure-JAX reference (Conv1d + train-mode BatchNorm1d + ReLU)."""
    y = jax.lax.conv_general_dilated(
        x, weight, window_strides=(s,), padding=[(p, p)],
        dimension_numbers=("NCH", "OIH", "NCH"),
    ) + bias[None, :, None]
    mean = jnp.mean(y, axis=(0, 2), keepdims=True)
    var = jnp.mean((y - mean) ** 2, axis=(0, 2), keepdims=True)
    yhat = (y - mean) * jax.lax.rsqrt(var + eps)
    yhat = yhat * gamma[None, :, None] + beta[None, :, None]
    return jnp.maximum(yhat, 0.0)


if __name__ == "__main__":
    # Small, module-consistent shapes.
    N, C_IN, L = 2, 4, 16
    C_OUT, K, S, P = 8, 3, 1, 1

    key = jax.random.PRNGKey(0)
    kx, kw, kb, kg, kbe = jax.random.split(key, 5)

    x = jax.random.normal(kx, (N, C_IN, L), dtype=jnp.float32)
    fan_in = C_IN * K
    bound = 1.0 / (fan_in ** 0.5)
    weight = jax.random.uniform(kw, (C_OUT, C_IN, K), jnp.float32, -bound, bound)
    bias = jax.random.uniform(kb, (C_OUT,), jnp.float32, -bound, bound)
    # Non-trivial affine params to also exercise the gamma/beta fold.
    gamma = 1.0 + 0.1 * jax.random.normal(kg, (C_OUT,), dtype=jnp.float32)
    beta = 0.1 * jax.random.normal(kbe, (C_OUT,), dtype=jnp.float32)

    fn = jax.jit(functools.partial(dxnet_block, k=K, s=S, p=P))
    out = fn(x, weight, bias, gamma, beta)
    jax.block_until_ready(out)

    ref = _reference(x, weight, bias, gamma, beta, k=K, s=S, p=P)
    assert out.shape == (N, C_OUT, (L + 2 * P - K) // S + 1)
    # Tolerance leaves room for MXU multi-pass f32 matmul rounding on real hardware.
    err = float(jnp.max(jnp.abs(out - ref)))
    assert jnp.allclose(out, ref, atol=2e-3, rtol=2e-3), err

    print("KERNEL_OK")
</pallas_src>

<mosaic_0001>
module attributes {stable_mosaic.version = 11 : i64} {
  func.func @_conv_stats_kernel(%arg0: i32, %arg1: memref<1x8x130xf32, #tpu.memory_space<vmem>>, %arg2: memref<8x24xf32, #tpu.memory_space<vmem>>, %arg3: memref<1x8x128xf32, #tpu.memory_space<vmem>>, %arg4: memref<1x8x1xf32, #tpu.memory_space<vmem>>, %arg5: memref<1x8x1xf32, #tpu.memory_space<vmem>>) attributes {dimension_semantics = [#tpu.dimension_semantics<parallel>], iteration_bounds = array<i64: 2>, scalar_prefetch = 0 : i64, scratch_operands = 0 : i64, tpu.core_type = #tpu.core_type<tc>, window_params = [{transform_indices = @transform_0, window_bounds = array<i64: 1, 8, 130>}, {pipeline_mode = #tpu.pipeline_mode<synchronous>, transform_indices = @transform_1, window_bounds = array<i64: 8, 24>}, {transform_indices = @transform_2, window_bounds = array<i64: 1, 8, 128>}, {transform_indices = @transform_3, window_bounds = array<i64: 1, 8, 1>}, {transform_indices = @transform_4, window_bounds = array<i64: 1, 8, 1>}]} {
    %c0 = arith.constant 0 : index
    %c0_0 = arith.constant 0 : index
    %0 = vector.load %arg2[%c0, %c0_0] : memref<8x24xf32, #tpu.memory_space<vmem>>, vector<8x24xf32>
    %cst = arith.constant 0.000000e+00 : f32
    %1 = vector.broadcast %cst : f32 to vector<8x1xf32>
    %cst_1 = arith.constant 0.000000e+00 : f32
    %2 = vector.broadcast %cst_1 : f32 to vector<8x1xf32>
    %c0_2 = arith.constant 0 : index
    %c0_3 = arith.constant 0 : index
    %c0_4 = arith.constant 0 : index
    %3 = vector.load %arg1[%c0_2, %c0_3, %c0_4] : memref<1x8x130xf32, #tpu.memory_space<vmem>>, vector<1x8x128xf32>
    %4 = vector.shape_cast %3 : vector<1x8x128xf32> to vector<8x128xf32>
    %c0_5 = arith.constant 0 : index
    %c0_6 = arith.constant 0 : index
    %c1 = arith.constant 1 : index
    %5 = vector.load %arg1[%c0_5, %c0_6, %c1] : memref<1x8x130xf32, #tpu.memory_space<vmem>>, vector<1x8x128xf32>
    %6 = vector.shape_cast %5 : vector<1x8x128xf32> to vector<8x128xf32>
    %c0_7 = arith.constant 0 : index
    %c0_8 = arith.constant 0 : index
    %c2 = arith.constant 2 : index
    %7 = vector.load %arg1[%c0_7, %c0_8, %c2] : memref<1x8x130xf32, #tpu.memory_space<vmem>>, vector<1x8x128xf32>
    %8 = vector.shape_cast %7 : vector<1x8x128xf32> to vector<8x128xf32>
    %9 = tpu.concatenate %4, %6, %8 in 0 : vector<8x128xf32>, vector<8x128xf32>, vector<8x128xf32> -> vector<24x128xf32>
    %cst_9 = arith.constant dense<0.000000e+00> : vector<8x128xf32>
    %10 = tpu.matmul %0, %9, %cst_9 {dimension_numbers = #tpu.dot_dimension_numbers<[1], [0], [0], [1], [0, 0, 1, 1], [], []>} : vector<8x24xf32>, vector<24x128xf32>, vector<8x128xf32> -> vector<8x128xf32>
    %11 = tpu.iota {dimensions = array<i32: 1>} : vector<8x128xi32>
    %c16_i32 = arith.constant 16 : i32
    %12 = vector.broadcast %c16_i32 : i32 to vector<8x128xi32>
    %13 = arith.cmpi slt, %11, %12 : vector<8x128xi32>
    %cst_10 = arith.constant 0.000000e+00 : f32
    %14 = vector.broadcast %cst_10 : f32 to vector<8x128xf32>
    %15 = arith.select %13, %10, %14 : vector<8x128xi1>, vector<8x128xf32>
    %c0_11 = arith.constant 0 : index
    %c0_12 = arith.constant 0 : index
    %c0_13 = arith.constant 0 : index
    %16 = vector.load %arg3[%c0_11, %c0_12, %c0_13] : memref<1x8x128xf32, #tpu.memory_space<vmem>>, vector<1x8x128xf32>
    %17 = vector.shape_cast %16 : vector<1x8x128xf32> to vector<8x128xf32>
    %18 = vector.shape_cast %15 : vector<8x128xf32> to vector<1x8x128xf32>
    tpu.vector_store %arg3[%c0_11, %c0_12, %c0_13], %18 {strides = array<i32>} : memref<1x8x128xf32, #tpu.memory_space<vmem>>, vector<1x8x128xf32>,
    %cst_14 = arith.constant dense<0.000000e+00> : vector<8xf32>
    %19 = vector.multi_reduction <add>, %15, %cst_14 [1] : vector<8x128xf32> to vector<8xf32>
    %20 = vector.shape_cast %19 : vector<8xf32> to vector<8x1xf32>
    %21 = arith.addf %1, %20 : vector<8x1xf32>
    %22 = arith.mulf %15, %15 : vector<8x128xf32>
    %cst_15 = arith.constant dense<0.000000e+00> : vector<8xf32>
    %23 = vector.multi_reduction <add>, %22, %cst_15 [1] : vector<8x128xf32> to vector<8xf32>
    %24 = vector.shape_cast %23 : vector<8xf32> to vector<8x1xf32>
    %25 = arith.addf %2, %24 : vector<8x1xf32>
    %c0_16 = arith.constant 0 : index
    %c0_17 = arith.constant 0 : index
    %c0_18 = arith.constant 0 : index
    %26 = vector.load %arg4[%c0_16, %c0_17, %c0_18] : memref<1x8x1xf32, #tpu.memory_space<vmem>>, vector<1x8x1xf32>
    %27 = vector.shape_cast %26 : vector<1x8x1xf32> to vector<8x1xf32>
    %28 = vector.shape_cast %21 : vector<8x1xf32> to vector<1x8x1xf32>
    tpu.vector_store %arg4[%c0_16, %c0_17, %c0_18], %28 {strides = array<i32>} : memref<1x8x1xf32, #tpu.memory_space<vmem>>, vector<1x8x1xf32>,
    %c0_19 = arith.constant 0 : index
    %c0_20 = arith.constant 0 : index
    %c0_21 = arith.constant 0 : index
    %29 = vector.load %arg5[%c0_19, %c0_20, %c0_21] : memref<1x8x1xf32, #tpu.memory_space<vmem>>, vector<1x8x1xf32>
    %30 = vector.shape_cast %29 : vector<1x8x1xf32> to vector<8x1xf32>
    %31 = vector.shape_cast %25 : vector<8x1xf32> to vector<1x8x1xf32>
    tpu.vector_store %arg5[%c0_19, %c0_20, %c0_21], %31 {strides = array<i32>} : memref<1x8x1xf32, #tpu.memory_space<vmem>>, vector<1x8x1xf32>,
    return
  }
  func.func @transform_0(%arg0: i32) -> (i32, i32, i32) {
    %c0_i32 = arith.constant 0 : i32
    %c0_i32_0 = arith.constant 0 : i32
    %c0_i32_1 = arith.constant 0 : i32
    return %arg0, %c0_i32, %c0_i32_0 : i32, i32, i32
  }
  func.func @transform_1(%arg0: i32) -> (i32, i32) {
    %c0_i32 = arith.constant 0 : i32
    %c0_i32_0 = arith.constant 0 : i32
    %c0_i32_1 = arith.constant 0 : i32
    return %c0_i32, %c0_i32_0 : i32, i32
  }
  func.func @transform_2(%arg0: i32) -> (i32, i32, i32) {
    %c0_i32 = arith.constant 0 : i32
    %c0_i32_0 = arith.constant 0 : i32
    %c0_i32_1 = arith.constant 0 : i32
    return %arg0, %c0_i32, %c0_i32_0 : i32, i32, i32
  }
  func.func @transform_3(%arg0: i32) -> (i32, i32, i32) {
    %c0_i32 = arith.constant 0 : i32
    %c0_i32_0 = arith.constant 0 : i32
    %c0_i32_1 = arith.constant 0 : i32
    return %arg0, %c0_i32, %c0_i32_0 : i32, i32, i32
  }
  func.func @transform_4(%arg0: i32) -> (i32, i32, i32) {
    %c0_i32 = arith.constant 0 : i32
    %c0_i32_0 = arith.constant 0 : i32
    %c0_i32_1 = arith.constant 0 : i32
    return %arg0, %c0_i32, %c0_i32_0 : i32, i32, i32
  }
}

module attributes {stable_mosaic.version = 11 : i64} {
  func.func @_bn_relu_kernel(%arg0: i32, %arg1: i32, %arg2: memref<2x8x128xf32, #tpu.memory_space<vmem>>, %arg3: memref<8x1xf32, #tpu.memory_space<vmem>>, %arg4: memref<8x1xf32, #tpu.memory_space<vmem>>, %arg5: memref<2x8x128xf32, #tpu.memory_space<vmem>>) attributes {dimension_semantics = [#tpu.dimension_semantics<parallel>, #tpu.dimension_semantics<parallel>], iteration_bounds = array<i64: 1, 1>, scalar_prefetch = 0 : i64, scratch_operands = 0 : i64, tpu.core_type = #tpu.core_type<tc>, window_params = [{transform_indices = @transform_0, window_bounds = array<i64: 2, 8, 128>}, {pipeline_mode = #tpu.pipeline_mode<synchronous>, transform_indices = @transform_1, window_bounds = array<i64: 8, 1>}, {pipeline_mode = #tpu.pipeline_mode<synchronous>, transform_indices = @transform_2, window_bounds = array<i64: 8, 1>}, {transform_indices = @transform_3, window_bounds = array<i64: 2, 8, 128>}]} {
    %c0 = arith.constant 0 : index
    %c0_0 = arith.constant 0 : index
    %c0_1 = arith.constant 0 : index
    %0 = vector.load %arg2[%c0, %c0_0, %c0_1] : memref<2x8x128xf32, #tpu.memory_space<vmem>>, vector<2x8x128xf32>
    %c0_2 = arith.constant 0 : index
    %c0_3 = arith.constant 0 : index
    %1 = vector.load %arg3[%c0_2, %c0_3] : memref<8x1xf32, #tpu.memory_space<vmem>>, vector<8x1xf32>
    %2 = vector.shape_cast %1 : vector<8x1xf32> to vector<1x8x1xf32>
    %c0_4 = arith.constant 0 : index
    %c0_5 = arith.constant 0 : index
    %3 = vector.load %arg4[%c0_4, %c0_5] : memref<8x1xf32, #tpu.memory_space<vmem>>, vector<8x1xf32>
    %4 = vector.shape_cast %3 : vector<8x1xf32> to vector<1x8x1xf32>
    %5 = vector.broadcast %2 : vector<1x8x1xf32> to vector<2x8x128xf32>
    %6 = arith.mulf %0, %5 : vector<2x8x128xf32>
    %7 = vector.broadcast %4 : vector<1x8x1xf32> to vector<2x8x128xf32>
    %8 = arith.addf %6, %7 : vector<2x8x128xf32>
    %cst = arith.constant 0.000000e+00 : f32
    %9 = vector.broadcast %cst : f32 to vector<2x8x128xf32>
    %10 = arith.maximumf %8, %9 : vector<2x8x128xf32>
    %c0_6 = arith.constant 0 : index
    %c0_7 = arith.constant 0 : index
    %c0_8 = arith.constant 0 : index
    %11 = vector.load %arg5[%c0_6, %c0_7, %c0_8] : memref<2x8x128xf32, #tpu.memory_space<vmem>>, vector<2x8x128xf32>
    tpu.vector_store %arg5[%c0_6, %c0_7, %c0_8], %10 {strides = array<i32>} : memref<2x8x128xf32, #tpu.memory_space<vmem>>, vector<2x8x128xf32>,
    return
  }
  func.func @transform_0(%arg0: i32, %arg1: i32) -> (i32, i32, i32) {
    %c0_i32 = arith.constant 0 : i32
    %c0_i32_0 = arith.constant 0 : i32
    return %arg0, %c0_i32, %arg1 : i32, i32, i32
  }
  func.func @transform_1(%arg0: i32, %arg1: i32) -> (i32, i32) {
    %c0_i32 = arith.constant 0 : i32
    %c0_i32_0 = arith.constant 0 : i32
    %c0_i32_1 = arith.constant 0 : i32
    return %c0_i32, %c0_i32_0 : i32, i32
  }
  func.func @transform_2(%arg0: i32, %arg1: i32) -> (i32, i32) {
    %c0_i32 = arith.constant 0 : i32
    %c0_i32_0 = arith.constant 0 : i32
    %c0_i32_1 = arith.constant 0 : i32
    return %c0_i32, %c0_i32_0 : i32, i32
  }
  func.func @transform_3(%arg0: i32, %arg1: i32) -> (i32, i32, i32) {
    %c0_i32 = arith.constant 0 : i32
    %c0_i32_0 = arith.constant 0 : i32
    return %arg0, %c0_i32, %arg1 : i32, i32, i32
  }
}

</mosaic_0001>

<bundles_post_ra>
// kernel: dxnet_block.3
= control target key start
LH: loop header
LB: loop body
LE: loop exit
PB: predicated region body
PF: predicated region fallthrough
CT: control target
= control target key end

     0   :  { %v42_v0 = vmov 0   ;;  %s81_s1 = inlined_call_operand.vmem [shape: f32[8,1], index: 1, kind: input, shape index: {}]   ;;  %s82_s2 = inlined_call_operand.vmem [shape: f32[8,1], index: 2, kind: input, shape index: {}]   ;;  %s83_s0 = inlined_call_operand.vmem [shape: f32[2,8,128], index: 0, kind: input, shape index: {}, may-alias: {0,3}]   ;;  %s84_s3 = inlined_call_operand.vmem [shape: f32[2,8,128], index: 3, kind: output, shape index: {}, may-alias: {0,3}]  }
   0x1   :  { %41 = vset.pattern.permute.xlu0 %v42_v0  ;;  %v16_v1 = vld [vmem:[%s81_s1] sm:$0xff]  ;;  %v15_v5 = vld [vmem:[%s83_s0 + $0x8] sm:$0xff] }
   0x2   :  { %20 = vperm.xlu0 %41, %v16_v1   ;;  %v17_v2 = vld [vmem:[%s82_s2] sm:$0xff] }
   0x3   :  { %v14_v4 = vld [vmem:[%s83_s0] sm:$0xff] }
   0xa   :  { %27 = vperm.xlu0 %41, %v17_v2  }
  0x74   :  { %v21_v3 = vpop.permute.xlu0 %20 }
  0x75   :  { %v23_v6 = vmul.f32 %v21_v3, %v14_v4  ;;  %v24_v7 = vmul.f32 %v21_v3, %v15_v5 }
  0x7c   :  { %v28_v8 = vpop.permute.xlu0 %27 }
  0x7d   :  { %v30_v9 = vadd.f32 %v28_v8, %v23_v6  ;;  %v31_v10 = vadd.f32 %v28_v8, %v24_v7 }
  0x7f   :  { %v32_v11 = vmax.f32 %v30_v9, 0.0  ;;  %v33_v12 = vmax.f32 %v31_v10, 0.0 }
  0x81   :  { %34 = vst [vmem:[%s84_s3] sm:$0xff] %v32_v11 }
  0x82   :  { %35 = vst [vmem:[%s84_s3 + $0x8] sm:$0xff] %v33_v12 }

// kernel: dxnet_block.2
= control target key start
LH: loop header
LB: loop body
LE: loop exit
PB: predicated region body
PF: predicated region fallthrough
CT: control target
= control target key end

     0   :  { %s459_s15 = smov 0   ;;  %s485_s0 = inlined_call_operand.vmem [shape: f32[2,8,130], index: 0, kind: input, shape index: {}]   ;;  %s486_s1 = inlined_call_operand.vmem [shape: f32[8,24], index: 1, kind: input, shape index: {}]   ;;  %s487_s2 = inlined_call_operand.vmem [shape: f32[2,8,128], index: 2, kind: output, shape index: {0}]   ;;  %s488_s3 = inlined_call_operand.vmem [shape: f32[2,8,1], index: 3, kind: output, shape index: {1}]   ;;  %s489_s4 = inlined_call_operand.vmem [shape: f32[2,8,1], index: 4, kind: output, shape index: {2}]  }
   0x1 LB: > { %s390_s16 = sadd.s32 4294967295, %s430_s15   ;;  %p394_p0 = scmp.ge.s32.totalorder %s430_s15, 1  ;;  %s430_s15 = sphi %s459_s15, %s15_s15  }
   0x2   : > { %p167_p1 = scmp.lt.s32.totalorder %s430_s15, 3 }
   0x4   : > { %p168_p2 = pnand %p394_p0, %p167_p1 }
   0x5   : > { %p200_p3 = scmp.lt.s32.totalorder (!%p168_p2), %s390_s16, 1  ;;  %s432_s21 = smov (!%p168_p2), 126  }
   0x6   : > { %171 = sbr.rel (%p168_p2) target bundleno = 398 (0x18e), region = 28  ;;  %s433_s22 = smov (!%p168_p2), 127  }
   0xb   : > { %s491_s16 = smov (!%p200_p3, %s390_s16), 1  ;;  %vm233_vm0 = vcmask 1031168   ;;  %vm226_vm1 = vcmask 1039360   ;;  %v217_v11 = vld [vmem:[%s486_s1] sm:$0xff]  ;;  %vm236_vm2 = vcmask 195584   ;;  %v260_v12 = vlaneseq }
   0xc   : > { %s403_s17 = sshll.u32 %s491_s16, 4  ;;  %s397_s25 = sshll.u32 %s491_s16, 3  ;;  %vm272_vm4 = vcmask 7168  }
   0xd   : > { %s204_s20 = scalar_lea.vmem %s485_s0, %s403_s17  ;;  %v261_v13 = vand.u32 127, %v260_v12  ;;  %s208_s28 = scalar_lea.vmem %s487_s2, %s397_s25 }
   0xe   : > { %v218_v0 = vld [vmem:[%s204_s20] sm:$0xff]  ;;  %v219_v1 = vld [vmem:[%s204_s20 + $0x8] sm:$0xff]  ;;  %s212_s5 = scalar_lea.vmem %s488_s3, %s397_s25  ;;  %s216_s8 = scalar_lea.vmem %s489_s4, %s397_s25 }
   0xf   : > { %v414_v2 = vpack.i.bf16 %v219_v1, %v218_v0  ;;  %vm262_vm3 = vcmp.lt.s32.totalorder %v261_v13, 16 }
  0x11   : > { %415 = vrot.lane.b32.xlu0 %v414_v2, %s432_s21 }
  0x19   : > { %420 = vrot.lane.b32.xlu0 %v414_v2, %s433_s22 }
  0x83   : > { %v416_v3 = vpop.permute.xlu0 %415 }
  0x84   : > { %v418_v4 = vunpack.i.h.bf16 %v416_v3  ;;  %v417_v5 = vunpack.i.l.bf16 %v416_v3 }
  0x86   : > { %v234_v6 = vsel %vm233_vm0, %v417_v5, %v418_v4 }
  0x87   : > { %253 = vmatpush.msra.mxu0 %v234_v6 }
  0x8b   : > { %v421_v7 = vpop.permute.xlu0 %420 }
  0x8c   : > { %v423_v8 = vunpack.i.h.bf16 %v421_v7  ;;  %v422_v9 = vunpack.i.l.bf16 %v421_v7 }
  0x8e   : > { %v227_v10 = vsel %vm226_vm1, %v422_v9, %v423_v8 }
  0x8f   : > { %254 = vmatpush.msra.mxu0 %v227_v10 }
  0x91   : > { %255 = vmatpush.msra.mxu0 %v218_v0 }
  0x92   : > { %400 = vmatmul.msk.f32.vlgmr.msra.gmra.mxu0 %vm236_vm2, %v217_v11 }
 0x10f   : > { %v257_v14 = vpop.f32.mrf.mxu0 }
 0x110   : > { %v263_v15 = vsel %vm262_vm3, %v257_v14, 0.0 }
 0x111   : > { %264 = vst [vmem:[%s208_s28] sm:$0xff] %v263_v15  ;;  %265 = vadd.xlane.f32.xlu1 %v263_v15  ;;  %v268_v16 = vmul.f32 %v263_v15, %v263_v15 }
 0x119   : > { %269 = vadd.xlane.f32.xlu1 %v268_v16 }
 0x184   : > { %v266_v17 = vpop.xlane.xlu1 %265 }
 0x185   : > { %273 = vst.msk [vmem:[%s212_s5] sm:$0xff] %vm272_vm4, %v266_v17 }
 0x18c   : > { %v270_v18 = vpop.xlane.xlu1 %269 }
 0x18d   : > { %274 = vst.msk [vmem:[%s216_s8] sm:$0xff] %vm272_vm4, %v270_v18 }
 0x18e PF: > { %s15_s15 = sadd.s32 1, %s430_s15  }
 0x18f   : > { %p12_p4 = scmp.ge.s32.totalorder %s15_s15, 4  }
 0x191   :  { %14 = sbr.rel (!%p12_p4) target bundleno = 1 (0x1), region = 82 }

</bundles_post_ra>
